<compile_context>
chip_gen: v7x
topology: tpu7x:2x2x1
jax: 0.10.0
libtpu: 0.0.40
codegen_flags: <defaults>
</compile_context>

<pallas_src>
import functools

import jax
import jax.numpy as jnp
import numpy as np
from jax.experimental import pallas as pl
from jax.experimental.pallas import tpu as pltpu


# ----------------------------- helpers ----------------------------------------


def _round_up(x, m):
    return ((x + m - 1) // m) * m


def _tpu_generation():
    """Best-effort TPU generation (5, 6, 7); 0 if unknown."""
    try:
        kind = jax.devices()[0].device_kind.lower()
    except Exception:
        return 0
    if "v5" in kind:
        return 5
    if "v6" in kind:
        return 6
    if "v7" in kind or "7x" in kind:
        return 7
    return 0


def _choose_tiling(seq_len, num_heads, itemsize=4):
    """Pick the query-row tile TQ, padded row count S_pad and a VMEM limit."""
    S, H = int(seq_len), int(num_heads)
    s_pad = _round_up(max(S, 1), 8)          # native sublane multiple
    gen = _tpu_generation()
    if gen in (5, 6):
        # 128 MiB physical VMEM: big blocks amortize the ~0.35 us/step overhead.
        target_block_bytes = 8 << 20
        vmem_limit = 64 << 20
    else:
        # v7x (or unknown): 64 MiB VMEM per TensorCore -> smaller blocks.
        target_block_bytes = 4 << 20
        vmem_limit = 48 << 20

    rows = target_block_bytes // max(1, H * S * itemsize)
    tq = max(8, (rows // 8) * 8)
    tq = min(tq, s_pad)

    n_q = pl.cdiv(s_pad, tq)
    if gen == 7 and s_pad >= 16:
        # Even grid-step count so dimension_semantics=("parallel",) gives the
        # two v7x TensorCores a balanced split.
        if n_q == 1:
            tq = _round_up(pl.cdiv(s_pad, 2), 8)
            n_q = pl.cdiv(s_pad, tq)
        if n_q > 1 and n_q % 2 == 1:
            for cand in range(tq, 7, -8):
                if pl.cdiv(s_pad, cand) % 2 == 0:
                    tq = cand
                    break
            n_q = pl.cdiv(s_pad, tq)
    return tq, s_pad, vmem_limit


def _layer_norm(x, gamma, beta, eps=1e-5):
    # nn.LayerNorm([2*max_positions - 1, H]): normalize over the whole table.
    mean = jnp.mean(x)
    var = jnp.mean(jnp.square(x - mean))
    return (x - mean) * jax.lax.rsqrt(var + eps) * gamma + beta


# ----------------------------- kernel -----------------------------------------


def _rel_bias_kernel(win_ref, out_ref, *, tq, w_pad, seq_len):
    """Build one (H, TQ, S) tile of the Toeplitz relative-position bias.

    win_ref : (1, H, W_pad)  per-tile window of the transposed, padded table:
              win[h, j + tq - r] == bias[M - 1 + j - (base + r), h]
    out_ref : (H, TQ, S)     out[h, r, j] = bias[M - 1 + j - (base + r), h]
    """
    S = seq_len
    win = win_ref[0]                                  # (H, W_pad)
    num_heads = out_ref.shape[0]
    # Row r must be shifted left by (tq - r); expressed as a non-negative
    # np.roll amount:  shift + r * stride = (w_pad - tq) + r  ==  -(tq - r) mod w_pad
    # and every per-row amount stays strictly inside [0, w_pad).
    shift = w_pad - tq
    for h in range(num_heads):                        # static unroll; H is small
        vb = jnp.broadcast_to(win[h:h + 1, :], (tq, w_pad))   # sublane broadcast
        rolled = pltpu.roll(vb, shift, 1, stride=1, stride_axis=0)
        # rolled[r, j] = win[h, (j - shift - r) mod w_pad] = win[h, j + tq - r]
        # (no wrap-around for the kept lanes j < S).
        out_ref[h, :, :] = rolled[:, :S]


# ----------------------------- wrapper -----------------------------------------


def _rel_bias(bias, max_positions, seq_len, gamma=None, beta=None):
    """Toeplitz relative bias in PyTorch layout: (1, H, S, S)."""
    M = int(max_positions)
    S = int(seq_len)
    K, H = bias.shape
    assert K == 2 * M - 1
    if S > M:
        # Guard here as well: an out-of-range S would otherwise read padded /
        # unintended table entries (VMEM reads are unchecked on TPU).
        raise ValueError(
            'Sequence length {} going beyond max length {}'.format(S, M))

    if gamma is not None:
        bias = _layer_norm(bias, gamma, beta)   # tiny table: plain XLA, done once

    tq, s_pad, vmem_limit = _choose_tiling(S, H)
    n_q = pl.cdiv(s_pad, tq)
    w_pad = _round_up(S + tq, 128)              # window width (lane multiple)
    pad_front = tq                              # keeps every window start >= 0
    pad_back = max(0, w_pad - tq - M)           # keeps every window end in bounds

    # (H, 2M-1) lane-major table, zero-padded so every window below is in range.
    tab = jnp.pad(bias.T.astype(jnp.float32), ((0, 0), (pad_front, pad_back)))

    # Per-grid-step windows (nQ, H, W_pad); window qi starts at M - 1 - qi*tq
    # (in padded coordinates).  Tiny gather, done once by XLA.
    starts = (M - 1) - jnp.arange(n_q, dtype=jnp.int32) * tq
    windows = jax.vmap(
        lambda s: jax.lax.dynamic_slice_in_dim(tab, s, w_pad, axis=1))(starts)

    # NOTE(v7x): if the output writeback is still exposed at small S, the next
    # knob is pipeline_mode=pl.Buffered(3) on out_specs (not needed by default).
    out = pl.pallas_call(
        functools.partial(_rel_bias_kernel, tq=tq, w_pad=w_pad, seq_len=S),
        out_shape=jax.ShapeDtypeStruct((H, s_pad, S), jnp.float32),
        grid=(n_q,),
        in_specs=[pl.BlockSpec((1, H, w_pad), lambda qi: (qi, 0, 0))],
        out_specs=pl.BlockSpec((H, tq, S), lambda qi: (0, qi, 0)),
        compiler_params=pltpu.CompilerParams(
            dimension_semantics=("parallel",),
            vmem_limit_bytes=vmem_limit,
        ),
    )(windows)

    # Rows [S, s_pad) are padding (built from zero-padded table entries) and are
    # dropped here (a no-op when S % 8 == 0).  The leading [None] is free.
    return out[None, :, :S, :]


# ----------------------------- module wrapper ---------------------------------


class SimpleRelativePositionalBiasPallas:
    def __init__(self, max_positions, num_heads=1, max_particles=None,
                 layer_norm=False, key=None):
        self.max_positions = max_positions
        self.num_heads = num_heads
        self.max_particles = max_particles
        self.layer_norm = layer_norm

        if key is None:
            key = jax.random.PRNGKey(0)
        k_t, k_p = jax.random.split(key)

        std = 0.02
        self.rel_pos_bias = std * jax.random.normal(
            k_t, (2 * max_positions - 1, num_heads), jnp.float32)
        self.ln_t_gamma = self.ln_t_beta = None
        if layer_norm:
            self.ln_t_gamma = jnp.ones((2 * max_positions - 1, num_heads), jnp.float32)
            self.ln_t_beta = jnp.zeros((2 * max_positions - 1, num_heads), jnp.float32)

        self.particle_rel_pos_bias = None
        self.ln_p_gamma = self.ln_p_beta = None
        if max_particles is not None:
            self.particle_rel_pos_bias = std * jax.random.normal(
                k_p, (2 * max_particles - 1, num_heads), jnp.float32)
            if layer_norm:
                self.ln_p_gamma = jnp.ones((2 * max_particles - 1, num_heads), jnp.float32)
                self.ln_p_beta = jnp.zeros((2 * max_particles - 1, num_heads), jnp.float32)

    def __call__(self, seq_len, num_particles=None):
        if seq_len > self.max_positions:
            raise ValueError('Sequence length {} going beyond max length {}'.format(
                seq_len, self.max_positions))

        t = _rel_bias(self.rel_pos_bias, self.max_positions, seq_len,
                      self.ln_t_gamma, self.ln_t_beta)          # (1, H, S, S)

        p = None
        if num_particles is not None and self.max_particles is not None:
            if num_particles > self.max_particles:
                raise ValueError('Num particles {} going beyond max particles {}'.format(
                    num_particles, self.max_particles))
            p = _rel_bias(self.particle_rel_pos_bias, self.max_particles,
                          num_particles, self.ln_p_gamma, self.ln_p_beta)  # (1, H, P, P)
            t = t[:, :, None, :, None, :]   # (1, H, 1, S, 1, S)
            p = p[:, :, :, None, :, None]   # (1, H, P, 1, P, 1)
        return t, p


# ----------------------------- demo / check -----------------------------------


if __name__ == "__main__":
    max_positions = 16
    num_heads = 4
    max_particles = 8
    seq_len = 8
    num_particles = 4

    mod = SimpleRelativePositionalBiasPallas(
        max_positions, num_heads=num_heads, max_particles=max_particles,
        layer_norm=False, key=jax.random.PRNGKey(0))

    # forward with particles
    t, p = mod(seq_len, num_particles)
    t = jax.block_until_ready(t)
    p = jax.block_until_ready(p)

    # forward without particles
    t_only, p_none = mod(seq_len)
    t_only = jax.block_until_ready(t_only)

    # ---- pure-numpy reference (same semantics as the PyTorch module) ----
    def toeplitz_ref(table, m, s):
        h = table.shape[1]
        ref = np.empty((1, h, s, s), np.float32)
        for i in range(s):
            for j in range(s):
                ref[0, :, i, j] = table[m - 1 + j - i, :]
        return ref

    bias_np = np.asarray(mod.rel_pos_bias)
    pbias_np = np.asarray(mod.particle_rel_pos_bias)
    ref_t = toeplitz_ref(bias_np, max_positions, seq_len)
    ref_p = toeplitz_ref(pbias_np, max_particles, num_particles)

    assert t_only.shape == (1, num_heads, seq_len, seq_len)
    assert p_none is None
    assert t.shape == (1, num_heads, 1, seq_len, 1, seq_len)
    assert p.shape == (1, num_heads, num_particles, 1, num_particles, 1)

    np.testing.assert_allclose(np.asarray(t_only), ref_t, rtol=1e-6, atol=1e-6)
    np.testing.assert_allclose(
        np.asarray(t), ref_t[:, :, None, :, None, :], rtol=1e-6, atol=1e-6)
    np.testing.assert_allclose(
        np.asarray(p), ref_p[:, :, :, None, :, None], rtol=1e-6, atol=1e-6)

    # ---- LayerNorm path check ----
    mod_ln = SimpleRelativePositionalBiasPallas(
        max_positions, num_heads=num_heads, layer_norm=True,
        key=jax.random.PRNGKey(1))
    t_ln, _ = mod_ln(seq_len)
    t_ln = jax.block_until_ready(t_ln)

    b64 = np.asarray(mod_ln.rel_pos_bias).astype(np.float64)
    normed = ((b64 - b64.mean()) / np.sqrt(b64.var() + 1e-5)).astype(np.float32)
    ref_ln = toeplitz_ref(normed, max_positions, seq_len)
    np.testing.assert_allclose(np.asarray(t_ln), ref_ln, rtol=1e-4, atol=1e-5)

    print("KERNEL_OK")
</pallas_src>

<mosaic_0001>
module attributes {stable_mosaic.version = 11 : i64} {
  func.func @_rel_bias_kernel(%arg0: i32, %arg1: memref<1x4x128xf32, #tpu.memory_space<vmem>>, %arg2: memref<4x8x8xf32, #tpu.memory_space<vmem>>) attributes {dimension_semantics = [#tpu.dimension_semantics<parallel>], iteration_bounds = array<i64: 1>, scalar_prefetch = 0 : i64, scratch_operands = 0 : i64, tpu.core_type = #tpu.core_type<tc>, window_params = [{transform_indices = @transform_0, window_bounds = array<i64: 1, 4, 128>}, {transform_indices = @transform_1, window_bounds = array<i64: 4, 8, 8>}]} {
    %c0 = arith.constant 0 : index
    %c0_0 = arith.constant 0 : index
    %c0_1 = arith.constant 0 : index
    %0 = vector.load %arg1[%c0, %c0_0, %c0_1] : memref<1x4x128xf32, #tpu.memory_space<vmem>>, vector<1x4x128xf32>
    %1 = vector.shape_cast %0 : vector<1x4x128xf32> to vector<4x128xf32>
    %2 = vector.extract_strided_slice %1 {offsets = [0, 0], sizes = [1, 128], strides = [1, 1]} : vector<4x128xf32> to vector<1x128xf32>
    %3 = vector.shape_cast %2 : vector<1x128xf32> to vector<1x128xf32>
    %4 = vector.broadcast %3 : vector<1x128xf32> to vector<8x128xf32>
    %c120_i32 = arith.constant 120 : i32
    %5 = tpu.dynamic_rotate %4 by %c120_i32 dim 1 {stride = 1 : si32, stride_dimension = 0 : si32} : vector<8x128xf32>, i32 -> vector<8x128xf32>
    %6 = vector.extract_strided_slice %5 {offsets = [0, 0], sizes = [8, 8], strides = [1, 1]} : vector<8x128xf32> to vector<8x8xf32>
    %c0_2 = arith.constant 0 : index
    %c0_3 = arith.constant 0 : index
    %c0_4 = arith.constant 0 : index
    %7 = vector.load %arg2[%c0_2, %c0_3, %c0_4] : memref<4x8x8xf32, #tpu.memory_space<vmem>>, vector<1x8x8xf32>
    %8 = vector.shape_cast %7 : vector<1x8x8xf32> to vector<8x8xf32>
    %9 = vector.shape_cast %6 : vector<8x8xf32> to vector<1x8x8xf32>
    tpu.vector_store %arg2[%c0_2, %c0_3, %c0_4], %9 {strides = array<i32>} : memref<4x8x8xf32, #tpu.memory_space<vmem>>, vector<1x8x8xf32>,
    %10 = vector.extract_strided_slice %1 {offsets = [1, 0], sizes = [1, 128], strides = [1, 1]} : vector<4x128xf32> to vector<1x128xf32>
    %11 = vector.shape_cast %10 : vector<1x128xf32> to vector<1x128xf32>
    %12 = vector.broadcast %11 : vector<1x128xf32> to vector<8x128xf32>
    %c120_i32_5 = arith.constant 120 : i32
    %13 = tpu.dynamic_rotate %12 by %c120_i32_5 dim 1 {stride = 1 : si32, stride_dimension = 0 : si32} : vector<8x128xf32>, i32 -> vector<8x128xf32>
    %14 = vector.extract_strided_slice %13 {offsets = [0, 0], sizes = [8, 8], strides = [1, 1]} : vector<8x128xf32> to vector<8x8xf32>
    %c1 = arith.constant 1 : index
    %c0_6 = arith.constant 0 : index
    %c0_7 = arith.constant 0 : index
    %15 = vector.load %arg2[%c1, %c0_6, %c0_7] : memref<4x8x8xf32, #tpu.memory_space<vmem>>, vector<1x8x8xf32>
    %16 = vector.shape_cast %15 : vector<1x8x8xf32> to vector<8x8xf32>
    %17 = vector.shape_cast %14 : vector<8x8xf32> to vector<1x8x8xf32>
    tpu.vector_store %arg2[%c1, %c0_6, %c0_7], %17 {strides = array<i32>} : memref<4x8x8xf32, #tpu.memory_space<vmem>>, vector<1x8x8xf32>,
    %18 = vector.extract_strided_slice %1 {offsets = [2, 0], sizes = [1, 128], strides = [1, 1]} : vector<4x128xf32> to vector<1x128xf32>
    %19 = vector.shape_cast %18 : vector<1x128xf32> to vector<1x128xf32>
    %20 = vector.broadcast %19 : vector<1x128xf32> to vector<8x128xf32>
    %c120_i32_8 = arith.constant 120 : i32
    %21 = tpu.dynamic_rotate %20 by %c120_i32_8 dim 1 {stride = 1 : si32, stride_dimension = 0 : si32} : vector<8x128xf32>, i32 -> vector<8x128xf32>
    %22 = vector.extract_strided_slice %21 {offsets = [0, 0], sizes = [8, 8], strides = [1, 1]} : vector<8x128xf32> to vector<8x8xf32>
    %c2 = arith.constant 2 : index
    %c0_9 = arith.constant 0 : index
    %c0_10 = arith.constant 0 : index
    %23 = vector.load %arg2[%c2, %c0_9, %c0_10] : memref<4x8x8xf32, #tpu.memory_space<vmem>>, vector<1x8x8xf32>
    %24 = vector.shape_cast %23 : vector<1x8x8xf32> to vector<8x8xf32>
    %25 = vector.shape_cast %22 : vector<8x8xf32> to vector<1x8x8xf32>
    tpu.vector_store %arg2[%c2, %c0_9, %c0_10], %25 {strides = array<i32>} : memref<4x8x8xf32, #tpu.memory_space<vmem>>, vector<1x8x8xf32>,
    %26 = vector.extract_strided_slice %1 {offsets = [3, 0], sizes = [1, 128], strides = [1, 1]} : vector<4x128xf32> to vector<1x128xf32>
    %27 = vector.shape_cast %26 : vector<1x128xf32> to vector<1x128xf32>
    %28 = vector.broadcast %27 : vector<1x128xf32> to vector<8x128xf32>
    %c120_i32_11 = arith.constant 120 : i32
    %29 = tpu.dynamic_rotate %28 by %c120_i32_11 dim 1 {stride = 1 : si32, stride_dimension = 0 : si32} : vector<8x128xf32>, i32 -> vector<8x128xf32>
    %30 = vector.extract_strided_slice %29 {offsets = [0, 0], sizes = [8, 8], strides = [1, 1]} : vector<8x128xf32> to vector<8x8xf32>
    %c3 = arith.constant 3 : index
    %c0_12 = arith.constant 0 : index
    %c0_13 = arith.constant 0 : index
    %31 = vector.load %arg2[%c3, %c0_12, %c0_13] : memref<4x8x8xf32, #tpu.memory_space<vmem>>, vector<1x8x8xf32>
    %32 = vector.shape_cast %31 : vector<1x8x8xf32> to vector<8x8xf32>
    %33 = vector.shape_cast %30 : vector<8x8xf32> to vector<1x8x8xf32>
    tpu.vector_store %arg2[%c3, %c0_12, %c0_13], %33 {strides = array<i32>} : memref<4x8x8xf32, #tpu.memory_space<vmem>>, vector<1x8x8xf32>,
    return
  }
  func.func @transform_0(%arg0: i32) -> (i32, i32, i32) {
    %c0_i32 = arith.constant 0 : i32
    %c0_i32_0 = arith.constant 0 : i32
    %c0_i32_1 = arith.constant 0 : i32
    return %arg0, %c0_i32, %c0_i32_0 : i32, i32, i32
  }
  func.func @transform_1(%arg0: i32) -> (i32, i32, i32) {
    %c0_i32 = arith.constant 0 : i32
    %c0_i32_0 = arith.constant 0 : i32
    %c0_i32_1 = arith.constant 0 : i32
    return %c0_i32, %arg0, %c0_i32_0 : i32, i32, i32
  }
}

</mosaic_0001>

<bundles_post_ra>
// kernel: tpu_custom_call.1
= control target key start
LH: loop header
LB: loop body
LE: loop exit
PB: predicated region body
PF: predicated region fallthrough
CT: control target
= control target key end

     0   :  { %6 = vsyncpa [#allocation3], 0  ;;  %s171_s0 = inlined_call_operand.hbm [shape: f32[1,4,128], index: 0, kind: input, shape index: {}]   ;;  %s172_s1 = inlined_call_operand.hbm [shape: f32[4,8,8], index: 1, kind: output, shape index: {}]  }
   0x1   :  { %7 = vsyncpa [#allocation4], 0  ;;  %s132_s6 = smov [#allocation2]   ;;  %s84_s10 = scalar_lea.hbm %s171_s0, 64 }
   0x2   :  { %s14_s7 = sshll.u32 %s132_s6, 4  ;;  %p85_p0 = scmp.ne.s32.totalorder %s171_s0, %s84_s10  ;;  %s15_s7 = int_to_ptr.vmem [resolvable:$true] %s14_s7 }
   0x3   :  { %p88_p1 = scmp.lt.u32.totalorder %s84_s10, %s171_s0 }
   0x5   :  { %p90_p2 = pnand %p88_p1, %p85_p0 }
   0x7   :  { %93 = shalt.err (!%p90_p2)
}
   0x8   :  { %s94_s15 = scalar_lea.vmem %s15_s7, 64  ;;  %p99_p4 = scmp.lt.s32.totalorder %s15_s7, %s15_s7 }
   0x9   :  { %p95_p3 = scmp.ne.s32.totalorder %s15_s7, %s94_s15  ;;  %p100_p5 = scmp.lt.s32.totalorder %s94_s15, %s94_s15 }
   0xb   :  { %p101_p6 = por %p100_p5, %p99_p4 }
   0xd   :  { %p102_p7 = pnand %p101_p6, %p95_p3 }
   0xf   :  { %105 = shalt.err (!%p102_p7)
}
  0x10   :  { %17 = dma.hbm_to_vmem [thread:$0]  %s171_s0, 64, %s15_s7, [#allocation3]  }
  0x11   :  { %128 = dma.done.wait [#allocation3], 64  }
  0x12   :  { %129 = vsyncadd [#allocation3], 4294967232  ;;  %v22_v0 = vlaneseq  ;;  %v21_v6 = vld [vmem:[#allocation2] sm:$0xf]  ;;  %s133_s18 = smov 376   ;;  %vm30_vm0 = vcmask 64512  }
  0x13   :  { %s134_s0 = smov [#allocation5]  }
  0x14   :  { %v23_v1 = vshrl.u32 %v22_v0, 7  ;;  %s67_s19 = sshll.u32 %s134_s0, 4  ;;  %s68_s19 = int_to_ptr.vmem [resolvable:$true] %s67_s19 }
  0x15   :  { %s106_s20 = scalar_lea.vmem %s68_s19, 512  ;;  %p111_p9 = scmp.lt.s32.totalorder %s68_s19, %s68_s19 }
  0x16   :  { %v44_v2 = vsub.s32 2, %v23_v1  ;;  %v24_v3 = vsub.s32 0, %v23_v1  ;;  %v54_v4 = vsub.s32 3, %v23_v1  ;;  %v34_v5 = vsub.s32 1, %v23_v1  ;;  %p107_p8 = scmp.ne.s32.totalorder %s68_s19, %s106_s20  ;;  %p112_p10 = scmp.lt.s32.totalorder %s106_s20, %s106_s20 }
  0x18   :  { %v45_v7 = vrot.slane %v21_v6, %v44_v2  ;;  %v25_v8 = vrot.slane %v21_v6, %v24_v3  ;;  %v55_v9 = vrot.slane %v21_v6, %v54_v4  ;;  %v35_v10 = vrot.slane %v21_v6, %v34_v5  ;;  %p113_p11 = por %p112_p10, %p111_p9 }
  0x1a   :  { %48 = vrot.lane.b32.xlu1 %v45_v7, %s133_s18  ;;  %28 = vrot.lane.b32.xlu0 %v25_v8, %s133_s18  ;;  %p114_p12 = pnand %p113_p11, %p107_p8 }
  0x1e   :  { %58 = vrot.lane.b32.xlu1 %v55_v9, %s133_s18  ;;  %38 = vrot.lane.b32.xlu0 %v35_v10, %s133_s18 }
  0x8c   :  { %v49_v11 = vpop.permute.xlu1 %48  ;;  %v29_v12 = vpop.permute.xlu0 %28 }
  0x8d   :  { %51 = vst.msk [vmem:[#allocation5 + $0x10] sm:$0xff] %vm30_vm0, %v49_v11  ;;  %31 = vst.msk [vmem:[#allocation5] sm:$0xff] %vm30_vm0, %v29_v12 }
  0x90   :  { %v59_v13 = vpop.permute.xlu1 %58  ;;  %v39_v14 = vpop.permute.xlu0 %38 }
  0x91   :  { %61 = vst.msk [vmem:[#allocation5 + $0x18] sm:$0xff] %vm30_vm0, %v59_v13  ;;  %41 = vst.msk [vmem:[#allocation5 + $0x8] sm:$0xff] %vm30_vm0, %v39_v14 }
  0x92   :  { %117 = shalt.err (!%p114_p12)
}
  0x93   :  { %s118_s23 = scalar_lea.hbm %s172_s1, 512 }
  0x94   :  { %p119_p13 = scmp.ne.s32.totalorder %s172_s1, %s118_s23  ;;  %p122_p0 = scmp.lt.u32.totalorder %s118_s23, %s172_s1 }
  0x96   :  { %p124_p1 = pnand %p122_p0, %p119_p13 }
  0x98   :  { %127 = shalt.err (!%p124_p1)
}
  0x99   :  { %s135_s28 = smov 128   ;;  %s136_s29 = smov 8  }
  0x9a   :  { %73 = dma.vmem_to_hbm [thread:$0]  %s68_s19, 512, %s172_s1, [#allocation4], %s135_s28, %s135_s28, %s136_s29  }
  0x9b   :  { %130 = dma.done.wait [#allocation4], 512  }
  0x9c   :  { %131 = vsyncadd [#allocation4], 4294966784 }
  0x9d   :  { %77 = vsyncpa [#allocation3], 1 }
  0x9e   :  { %78 = vsyncpa [#allocation4], 1 }

</bundles_post_ra>
